<compile_context>
chip_gen: v7x
topology: tpu7x:2x2x1
jax: 0.10.0
libtpu: 0.0.40
codegen_flags: <defaults>
</compile_context>

<pallas_src>
import jax
import jax.numpy as jnp
from jax.experimental import pallas as pl
from jax.experimental.pallas import tpu as pltpu


def _attention_mlm_kernel(
    g_ref,            # (TB, Sg, H)  bf16  global features
    l_ref,            # (TB, Sl, H)  bf16  local features
    wkv_ref, bkv_ref, # (H, 2H) bf16, (1, 2H) f32   fused key/value linear
    wq_ref, bq_ref,   # (H, H) bf16,  (1, H)  f32   query linear
    wc_ref, bc_ref,   # (H, H) bf16,  (1, H)  f32   context linear
    wm_ref, bm_ref,   # (H, TV) bf16, (1, TV) f32   mlm-head tile
    out_ref,          # (TB, Sl, TV) f32            logits tile
    proc_ref,         # (TB*Sl, H)   bf16 scratch: cached context-layer output
):
    v_idx = pl.program_id(1)

    # Attention + context layer depend only on the batch block: compute once
    # (first vocab tile) and cache in VMEM scratch for the remaining V tiles.
    @pl.when(v_idx == 0)
    def _compute_attention():
        g = g_ref[...]
        l = l_ref[...]
        TB, Sl, H = l.shape
        Sg = g.shape[1]

        # Fused key/value projection: one (TB*Sg, H) @ (H, 2H) MXU matmul.
        kv = jnp.dot(g.reshape(TB * Sg, H), wkv_ref[...],
                     preferred_element_type=jnp.float32) + bkv_ref[...]
        keys = kv[:, :H].reshape(TB, Sg, H)
        values = kv[:, H:].reshape(TB, Sg, H)

        queries = (jnp.dot(l.reshape(TB * Sl, H), wq_ref[...],
                           preferred_element_type=jnp.float32)
                   + bq_ref[...]).reshape(TB, Sl, H)

        # attention_scores = queries @ keys^T  (contraction on the feature dim;
        # no explicit transpose of keys).
        scores = jnp.einsum("bqh,bkh->bqk",
                            queries.astype(jnp.bfloat16),
                            keys.astype(jnp.bfloat16),
                            preferred_element_type=jnp.float32)   # (TB, Sl, Sg)

        # softmax over the last dim (f32)
        m = jnp.max(scores, axis=-1, keepdims=True)
        e = jnp.exp(scores - m)
        w = e * pl.reciprocal(jnp.sum(e, axis=-1, keepdims=True), approx=True)

        # context = weights @ values -> (TB, Sl, H)
        context = jnp.einsum("bqk,bkh->bqh",
                             w.astype(jnp.bfloat16),
                             values.astype(jnp.bfloat16),
                             preferred_element_type=jnp.float32)

        # processed_context = context_layer(context), cached as bf16.
        processed = (jnp.dot(context.reshape(TB * Sl, H).astype(jnp.bfloat16),
                             wc_ref[...],
                             preferred_element_type=jnp.float32)
                     + bc_ref[...])
        proc_ref[...] = processed.astype(jnp.bfloat16)

    # mlm_head for this vocab tile: (TB*Sl, H) @ (H, TV) + bias.
    TB, Sl, TV = out_ref.shape
    logits = jnp.dot(proc_ref[...], wm_ref[...],
                     preferred_element_type=jnp.float32) + bm_ref[...]
    out_ref[...] = logits.reshape(TB, Sl, TV)


def custom_attention_mlm(global_features, local_features, params,
                         *, batch_tile=None, vocab_tile=128):
    """Fused CustomAttention + mlm_head.
       global_features (B, Sg, H), local_features (B, Sl, H) -> (B, Sl, V)."""
    B, Sg, H = global_features.shape
    _, Sl, _ = local_features.shape
    V = params["wm"].shape[1]

    TB = B if batch_tile is None else batch_tile
    TV = min(vocab_tile, V)
    assert B % TB == 0 and V % TV == 0
    assert H % 128 == 0 and TV % 128 == 0, "keep last dims lane-dense"
    nb, nv = B // TB, V // TV

    # bf16 operands for the MXU (accumulation stays f32 in-kernel); biases f32.
    bf16, f32 = jnp.bfloat16, jnp.float32
    gf = global_features.astype(bf16)
    lf = local_features.astype(bf16)
    wkv = jnp.concatenate([params["wk"], params["wv"]], axis=1).astype(bf16)
    bkv = jnp.concatenate([params["bk"], params["bv"]], axis=1).astype(f32)
    wq, bq = params["wq"].astype(bf16), params["bq"].astype(f32)
    wc, bc = params["wc"].astype(bf16), params["bc"].astype(f32)
    wm, bm = params["wm"].astype(bf16), params["bm"].astype(f32)

    def const_spec(shape):
        ndim = len(shape)
        return pl.BlockSpec(shape, lambda b, v: (0,) * ndim)

    grid_spec = pltpu.PrefetchScalarGridSpec(
        num_scalar_prefetch=0,
        grid=(nb, nv),
        in_specs=[
            pl.BlockSpec((TB, Sg, H), lambda b, v: (b, 0, 0)),
            pl.BlockSpec((TB, Sl, H), lambda b, v: (b, 0, 0)),
            const_spec((H, 2 * H)), const_spec((1, 2 * H)),   # fused key/value
            const_spec((H, H)), const_spec((1, H)),           # query
            const_spec((H, H)), const_spec((1, H)),           # context
            pl.BlockSpec((H, TV), lambda b, v: (0, v)),       # mlm-head weight tile
            pl.BlockSpec((1, TV), lambda b, v: (0, v)),       # mlm-head bias tile
        ],
        out_specs=pl.BlockSpec((TB, Sl, TV), lambda b, v: (b, 0, v)),
        scratch_shapes=[pltpu.VMEM((TB * Sl, H), bf16)],
    )

    flops = 2 * B * (Sg * H * 2 * H       # fused K/V projection
                     + Sl * H * H         # query projection
                     + 2 * Sl * Sg * H    # QK^T and attn @ V
                     + Sl * H * H         # context layer
                     + Sl * H * V)        # mlm head
    transcendentals = B * Sl * (Sg + 1)   # exp + reciprocal
    bytes_accessed = ((B * Sg * H + B * Sl * H) * 2            # activations (bf16)
                      + (2 * H * H + H * H + H * H + H * V) * 2  # weights (bf16)
                      + (2 * H + H + H + V) * 4                  # biases (f32)
                      + B * Sl * V * 4)                           # output (f32)

    return pl.pallas_call(
        _attention_mlm_kernel,
        out_shape=jax.ShapeDtypeStruct((B, Sl, V), jnp.float32),
        grid_spec=grid_spec,
        compiler_params=pltpu.CompilerParams(
            dimension_semantics=("parallel", "arbitrary"),
            vmem_limit_bytes=32 * 1024 * 1024),
        cost_estimate=pl.CostEstimate(
            flops=flops, transcendentals=transcendentals,
            bytes_accessed=bytes_accessed),
    )(gf, lf, wkv, bkv, wq, bq, wc, bc, wm, bm)


def init_params(key, hidden_size, vocab_size):
    ks = jax.random.split(key, 12)
    s = 0.02
    return {
        # embeddings standing in for the two BERT sequence processors
        "emb_global": s * jax.random.normal(ks[0], (vocab_size, hidden_size), jnp.float32),
        "emb_local":  s * jax.random.normal(ks[1], (vocab_size, hidden_size), jnp.float32),
        # CustomAttention linears, stored pre-transposed as (in, out)
        "wk": s * jax.random.normal(ks[2], (hidden_size, hidden_size), jnp.float32),
        "bk": s * jax.random.normal(ks[3], (1, hidden_size), jnp.float32),
        "wq": s * jax.random.normal(ks[4], (hidden_size, hidden_size), jnp.float32),
        "bq": s * jax.random.normal(ks[5], (1, hidden_size), jnp.float32),
        "wv": s * jax.random.normal(ks[6], (hidden_size, hidden_size), jnp.float32),
        "bv": s * jax.random.normal(ks[7], (1, hidden_size), jnp.float32),
        "wc": s * jax.random.normal(ks[8], (hidden_size, hidden_size), jnp.float32),
        "bc": s * jax.random.normal(ks[9], (1, hidden_size), jnp.float32),
        # mlm_head: hidden -> vocab, pre-transposed (H, V)
        "wm": s * jax.random.normal(ks[10], (hidden_size, vocab_size), jnp.float32),
        "bm": s * jax.random.normal(ks[11], (1, vocab_size), jnp.float32),
    }


def protein_interaction_forward(params, input_ids_global, attention_mask_global,
                                input_ids_local, attention_mask_local):
    # SequenceProcessor stand-ins (glue): embedding lookup -> (B, S, H)
    # TODO(synk): real model runs a pretrained BERT here (uses attention_mask_*).
    global_features = jnp.take(params["emb_global"], input_ids_global, axis=0)
    local_features = jnp.take(params["emb_local"], input_ids_local, axis=0)
    # Fused CustomAttention + mlm_head in Pallas
    return custom_attention_mlm(global_features, local_features, params)


def _reference_forward(params, input_ids_global, input_ids_local):
    # Pure-JAX reference mirroring the kernel's bf16-operand / f32-accumulate math.
    bf16, f32 = jnp.bfloat16, jnp.float32
    g = jnp.take(params["emb_global"], input_ids_global, axis=0).astype(bf16)
    l = jnp.take(params["emb_local"], input_ids_local, axis=0).astype(bf16)
    keys = jnp.einsum("bsh,hd->bsd", g, params["wk"].astype(bf16),
                      preferred_element_type=f32) + params["bk"]
    queries = jnp.einsum("bsh,hd->bsd", l, params["wq"].astype(bf16),
                         preferred_element_type=f32) + params["bq"]
    values = jnp.einsum("bsh,hd->bsd", g, params["wv"].astype(bf16),
                        preferred_element_type=f32) + params["bv"]
    scores = jnp.einsum("bqh,bkh->bqk", queries.astype(bf16), keys.astype(bf16),
                        preferred_element_type=f32)
    w = jax.nn.softmax(scores, axis=-1)
    ctx = jnp.einsum("bqk,bkh->bqh", w.astype(bf16), values.astype(bf16),
                     preferred_element_type=f32)
    pc = jnp.einsum("bqh,hd->bqd", ctx.astype(bf16), params["wc"].astype(bf16),
                    preferred_element_type=f32) + params["bc"]
    return jnp.einsum("bqh,hv->bqv", pc.astype(bf16), params["wm"].astype(bf16),
                      preferred_element_type=f32) + params["bm"]


if __name__ == "__main__":
    # Small but lane-dense shapes (H, V multiples of 128).
    B, S_GLOBAL, S_LOCAL, HIDDEN, VOCAB = 2, 16, 8, 128, 256

    key = jax.random.PRNGKey(0)
    k_param, k_idg, k_idl = jax.random.split(key, 3)

    params = init_params(k_param, HIDDEN, VOCAB)

    input_ids_global = jax.random.randint(k_idg, (B, S_GLOBAL), 0, VOCAB, dtype=jnp.int32)
    input_ids_local = jax.random.randint(k_idl, (B, S_LOCAL), 0, VOCAB, dtype=jnp.int32)
    attention_mask_global = jnp.ones((B, S_GLOBAL), dtype=jnp.int32)
    attention_mask_local = jnp.ones((B, S_LOCAL), dtype=jnp.int32)

    fwd = jax.jit(protein_interaction_forward)
    out = fwd(params, input_ids_global, attention_mask_global,
              input_ids_local, attention_mask_local)
    out = jax.block_until_ready(out)

    ref = _reference_forward(params, input_ids_global, input_ids_local)
    assert out.shape == (B, S_LOCAL, VOCAB)
    assert jnp.allclose(out, ref, atol=5e-4, rtol=5e-3), (
        float(jnp.max(jnp.abs(out - ref))))

    print("KERNEL_OK")
</pallas_src>

<mosaic_0001>
module attributes {stable_mosaic.version = 11 : i64} {
  func.func @_attention_mlm_kernel(%arg0: i32, %arg1: i32, %arg2: memref<2x16x128xbf16, #tpu.memory_space<vmem>>, %arg3: memref<2x8x128xbf16, #tpu.memory_space<vmem>>, %arg4: memref<128x256xbf16, #tpu.memory_space<vmem>>, %arg5: memref<1x256xf32, #tpu.memory_space<vmem>>, %arg6: memref<128x128xbf16, #tpu.memory_space<vmem>>, %arg7: memref<1x128xf32, #tpu.memory_space<vmem>>, %arg8: memref<128x128xbf16, #tpu.memory_space<vmem>>, %arg9: memref<1x128xf32, #tpu.memory_space<vmem>>, %arg10: memref<128x128xbf16, #tpu.memory_space<vmem>>, %arg11: memref<1x128xf32, #tpu.memory_space<vmem>>, %arg12: memref<2x8x128xf32, #tpu.memory_space<vmem>>, %arg13: memref<16x128xbf16, #tpu.memory_space<vmem>>) attributes {dimension_semantics = [#tpu.dimension_semantics<parallel>, #tpu.dimension_semantics<arbitrary>], iteration_bounds = array<i64: 1, 2>, scalar_prefetch = 0 : i64, scratch_operands = 1 : i64, tpu.core_type = #tpu.core_type<tc>, window_params = [{transform_indices = @transform_0, window_bounds = array<i64: 2, 16, 128>}, {transform_indices = @transform_1, window_bounds = array<i64: 2, 8, 128>}, {pipeline_mode = #tpu.pipeline_mode<synchronous>, transform_indices = @transform_2, window_bounds = array<i64: 128, 256>}, {pipeline_mode = #tpu.pipeline_mode<synchronous>, transform_indices = @transform_3, window_bounds = array<i64: 1, 256>}, {pipeline_mode = #tpu.pipeline_mode<synchronous>, transform_indices = @transform_4, window_bounds = array<i64: 128, 128>}, {pipeline_mode = #tpu.pipeline_mode<synchronous>, transform_indices = @transform_5, window_bounds = array<i64: 1, 128>}, {pipeline_mode = #tpu.pipeline_mode<synchronous>, transform_indices = @transform_6, window_bounds = array<i64: 128, 128>}, {pipeline_mode = #tpu.pipeline_mode<synchronous>, transform_indices = @transform_7, window_bounds = array<i64: 1, 128>}, {transform_indices = @transform_8, window_bounds = array<i64: 128, 128>}, {transform_indices = @transform_9, window_bounds = array<i64: 1, 128>}, {transform_indices = @transform_10, window_bounds = array<i64: 2, 8, 128>}]} {
    %c0_i32 = arith.constant 0 : i32
    %0 = arith.cmpi eq, %arg1, %c0_i32 : i32
    %1 = arith.extui %0 : i1 to i32
    %c0_i32_0 = arith.constant 0 : i32
    %2 = arith.cmpi ne, %1, %c0_i32_0 : i32
    scf.if %2 {
      %c0_9 = arith.constant 0 : index
      %c0_10 = arith.constant 0 : index
      %c0_11 = arith.constant 0 : index
      %11 = vector.load %arg2[%c0_9, %c0_10, %c0_11] : memref<2x16x128xbf16, #tpu.memory_space<vmem>>, vector<2x16x128xbf16>
      %c0_12 = arith.constant 0 : index
      %c0_13 = arith.constant 0 : index
      %c0_14 = arith.constant 0 : index
      %12 = vector.load %arg3[%c0_12, %c0_13, %c0_14] : memref<2x8x128xbf16, #tpu.memory_space<vmem>>, vector<2x8x128xbf16>
      %13 = vector.shape_cast %11 : vector<2x16x128xbf16> to vector<32x128xbf16>
      %c0_15 = arith.constant 0 : index
      %c0_16 = arith.constant 0 : index
      %14 = vector.load %arg4[%c0_15, %c0_16] : memref<128x256xbf16, #tpu.memory_space<vmem>>, vector<128x256xbf16>
      %cst_17 = arith.constant dense<0.000000e+00> : vector<32x256xf32>
      %15 = tpu.matmul %13, %14, %cst_17 {dimension_numbers = #tpu.dot_dimension_numbers<[1], [0], [0], [1], [0, 0, 1, 1], [], []>} : vector<32x128xbf16>, vector<128x256xbf16>, vector<32x256xf32> -> vector<32x256xf32>
      %c0_18 = arith.constant 0 : index
      %c0_19 = arith.constant 0 : index
      %16 = vector.load %arg5[%c0_18, %c0_19] : memref<1x256xf32, #tpu.memory_space<vmem>>, vector<1x256xf32>
      %17 = vector.broadcast %16 : vector<1x256xf32> to vector<32x256xf32>
      %18 = arith.addf %15, %17 : vector<32x256xf32>
      %19 = vector.extract_strided_slice %18 {offsets = [0, 0], sizes = [32, 128], strides = [1, 1]} : vector<32x256xf32> to vector<32x128xf32>
      %20 = vector.shape_cast %19 : vector<32x128xf32> to vector<2x16x128xf32>
      %21 = vector.extract_strided_slice %18 {offsets = [0, 128], sizes = [32, 128], strides = [1, 1]} : vector<32x256xf32> to vector<32x128xf32>
      %22 = vector.shape_cast %21 : vector<32x128xf32> to vector<2x16x128xf32>
      %23 = vector.shape_cast %12 : vector<2x8x128xbf16> to vector<16x128xbf16>
      %c0_20 = arith.constant 0 : index
      %c0_21 = arith.constant 0 : index
      %24 = vector.load %arg6[%c0_20, %c0_21] : memref<128x128xbf16, #tpu.memory_space<vmem>>, vector<128x128xbf16>
      %cst_22 = arith.constant dense<0.000000e+00> : vector<16x128xf32>
      %25 = tpu.matmul %23, %24, %cst_22 {dimension_numbers = #tpu.dot_dimension_numbers<[1], [0], [0], [1], [0, 0, 1, 1], [], []>} : vector<16x128xbf16>, vector<128x128xbf16>, vector<16x128xf32> -> vector<16x128xf32>
      %c0_23 = arith.constant 0 : index
      %c0_24 = arith.constant 0 : index
      %26 = vector.load %arg7[%c0_23, %c0_24] : memref<1x128xf32, #tpu.memory_space<vmem>>, vector<1x128xf32>
      %27 = vector.broadcast %26 : vector<1x128xf32> to vector<16x128xf32>
      %28 = arith.addf %25, %27 : vector<16x128xf32>
      %29 = vector.shape_cast %28 : vector<16x128xf32> to vector<2x8x128xf32>
      %30 = arith.truncf %29 : vector<2x8x128xf32> to vector<2x8x128xbf16>
      %31 = arith.truncf %20 : vector<2x16x128xf32> to vector<2x16x128xbf16>
      "tpu.trace_start"() <{level = 10 : i32, message = "bqh,bkh->bqk"}> : () -> ()
      %cst_25 = arith.constant dense<0.000000e+00> : vector<2x8x16xf32>
      %32 = tpu.matmul %30, %31, %cst_25 {dimension_numbers = #tpu.dot_dimension_numbers<[2], [2], [1], [1], [0, 0, 0, 1, 1, 1], [0], [0]>} : vector<2x8x128xbf16>, vector<2x16x128xbf16>, vector<2x8x16xf32> -> vector<2x8x16xf32>
      "tpu.trace_stop"() : () -> ()
      %cst_26 = arith.constant dense<0xFF800000> : vector<2x8xf32>
      %33 = vector.multi_reduction <maximumf>, %32, %cst_26 [2] : vector<2x8x16xf32> to vector<2x8xf32>
      %34 = vector.shape_cast %33 : vector<2x8xf32> to vector<2x8x1xf32>
      %35 = vector.broadcast %34 : vector<2x8x1xf32> to vector<2x8x16xf32>
      %36 = arith.subf %32, %35 : vector<2x8x16xf32>
      %37 = math.exp %36 : vector<2x8x16xf32>
      %cst_27 = arith.constant dense<0.000000e+00> : vector<2x8xf32>
      %38 = vector.multi_reduction <add>, %37, %cst_27 [2] : vector<2x8x16xf32> to vector<2x8xf32>
      %39 = vector.shape_cast %38 : vector<2x8xf32> to vector<2x8x1xf32>
      %40 = tpu.reciprocal %39 {approx = true} : vector<2x8x1xf32> -> vector<2x8x1xf32>
      %41 = vector.broadcast %40 : vector<2x8x1xf32> to vector<2x8x16xf32>
      %42 = arith.mulf %37, %41 : vector<2x8x16xf32>
      %43 = arith.truncf %42 : vector<2x8x16xf32> to vector<2x8x16xbf16>
      %44 = arith.truncf %22 : vector<2x16x128xf32> to vector<2x16x128xbf16>
      "tpu.trace_start"() <{level = 10 : i32, message = "bqk,bkh->bqh"}> : () -> ()
      %cst_28 = arith.constant dense<0.000000e+00> : vector<2x8x128xf32>
      %45 = tpu.matmul %43, %44, %cst_28 {dimension_numbers = #tpu.dot_dimension_numbers<[2], [1], [1], [2], [0, 0, 0, 1, 1, 2], [0], [0]>} : vector<2x8x16xbf16>, vector<2x16x128xbf16>, vector<2x8x128xf32> -> vector<2x8x128xf32>
      "tpu.trace_stop"() : () -> ()
      %46 = vector.shape_cast %45 : vector<2x8x128xf32> to vector<16x128xf32>
      %47 = arith.truncf %46 : vector<16x128xf32> to vector<16x128xbf16>
      %c0_29 = arith.constant 0 : index
      %c0_30 = arith.constant 0 : index
      %48 = vector.load %arg8[%c0_29, %c0_30] : memref<128x128xbf16, #tpu.memory_space<vmem>>, vector<128x128xbf16>
      %cst_31 = arith.constant dense<0.000000e+00> : vector<16x128xf32>
      %49 = tpu.matmul %47, %48, %cst_31 {dimension_numbers = #tpu.dot_dimension_numbers<[1], [0], [0], [1], [0, 0, 1, 1], [], []>} : vector<16x128xbf16>, vector<128x128xbf16>, vector<16x128xf32> -> vector<16x128xf32>
      %c0_32 = arith.constant 0 : index
      %c0_33 = arith.constant 0 : index
      %50 = vector.load %arg9[%c0_32, %c0_33] : memref<1x128xf32, #tpu.memory_space<vmem>>, vector<1x128xf32>
      %51 = vector.broadcast %50 : vector<1x128xf32> to vector<16x128xf32>
      %52 = arith.addf %49, %51 : vector<16x128xf32>
      %53 = arith.truncf %52 : vector<16x128xf32> to vector<16x128xbf16>
      %c0_34 = arith.constant 0 : index
      %c0_35 = arith.constant 0 : index
      %54 = vector.load %arg13[%c0_34, %c0_35] : memref<16x128xbf16, #tpu.memory_space<vmem>>, vector<16x128xbf16>
      tpu.vector_store %arg13[%c0_34, %c0_35], %53 {strides = array<i32>} : memref<16x128xbf16, #tpu.memory_space<vmem>>, vector<16x128xbf16>,
    } else {
    }
    %c0 = arith.constant 0 : index
    %c0_1 = arith.constant 0 : index
    %3 = vector.load %arg13[%c0, %c0_1] : memref<16x128xbf16, #tpu.memory_space<vmem>>, vector<16x128xbf16>
    %c0_2 = arith.constant 0 : index
    %c0_3 = arith.constant 0 : index
    %4 = vector.load %arg10[%c0_2, %c0_3] : memref<128x128xbf16, #tpu.memory_space<vmem>>, vector<128x128xbf16>
    %cst = arith.constant dense<0.000000e+00> : vector<16x128xf32>
    %5 = tpu.matmul %3, %4, %cst {dimension_numbers = #tpu.dot_dimension_numbers<[1], [0], [0], [1], [0, 0, 1, 1], [], []>} : vector<16x128xbf16>, vector<128x128xbf16>, vector<16x128xf32> -> vector<16x128xf32>
    %c0_4 = arith.constant 0 : index
    %c0_5 = arith.constant 0 : index
    %6 = vector.load %arg11[%c0_4, %c0_5] : memref<1x128xf32, #tpu.memory_space<vmem>>, vector<1x128xf32>
    %7 = vector.broadcast %6 : vector<1x128xf32> to vector<16x128xf32>
    %8 = arith.addf %5, %7 : vector<16x128xf32>
    %9 = vector.shape_cast %8 : vector<16x128xf32> to vector<2x8x128xf32>
    %c0_6 = arith.constant 0 : index
    %c0_7 = arith.constant 0 : index
    %c0_8 = arith.constant 0 : index
    %10 = vector.load %arg12[%c0_6, %c0_7, %c0_8] : memref<2x8x128xf32, #tpu.memory_space<vmem>>, vector<2x8x128xf32>
    tpu.vector_store %arg12[%c0_6, %c0_7, %c0_8], %9 {strides = array<i32>} : memref<2x8x128xf32, #tpu.memory_space<vmem>>, vector<2x8x128xf32>,
    return
  }
  func.func @transform_0(%arg0: i32, %arg1: i32) -> (i32, i32, i32) {
    %c0_i32 = arith.constant 0 : i32
    %c0_i32_0 = arith.constant 0 : i32
    %c0_i32_1 = arith.constant 0 : i32
    return %arg0, %c0_i32, %c0_i32_0 : i32, i32, i32
  }
  func.func @transform_1(%arg0: i32, %arg1: i32) -> (i32, i32, i32) {
    %c0_i32 = arith.constant 0 : i32
    %c0_i32_0 = arith.constant 0 : i32
    %c0_i32_1 = arith.constant 0 : i32
    return %arg0, %c0_i32, %c0_i32_0 : i32, i32, i32
  }
  func.func @transform_2(%arg0: i32, %arg1: i32) -> (i32, i32) {
    %c0_i32 = arith.constant 0 : i32
    %c0_i32_0 = arith.constant 0 : i32
    %c0_i32_1 = arith.constant 0 : i32
    return %c0_i32, %c0_i32_0 : i32, i32
  }
  func.func @transform_3(%arg0: i32, %arg1: i32) -> (i32, i32) {
    %c0_i32 = arith.constant 0 : i32
    %c0_i32_0 = arith.constant 0 : i32
    %c0_i32_1 = arith.constant 0 : i32
    return %c0_i32, %c0_i32_0 : i32, i32
  }
  func.func @transform_4(%arg0: i32, %arg1: i32) -> (i32, i32) {
    %c0_i32 = arith.constant 0 : i32
    %c0_i32_0 = arith.constant 0 : i32
    %c0_i32_1 = arith.constant 0 : i32
    return %c0_i32, %c0_i32_0 : i32, i32
  }
  func.func @transform_5(%arg0: i32, %arg1: i32) -> (i32, i32) {
    %c0_i32 = arith.constant 0 : i32
    %c0_i32_0 = arith.constant 0 : i32
    %c0_i32_1 = arith.constant 0 : i32
    return %c0_i32, %c0_i32_0 : i32, i32
  }
  func.func @transform_6(%arg0: i32, %arg1: i32) -> (i32, i32) {
    %c0_i32 = arith.constant 0 : i32
    %c0_i32_0 = arith.constant 0 : i32
    %c0_i32_1 = arith.constant 0 : i32
    return %c0_i32, %c0_i32_0 : i32, i32
  }
  func.func @transform_7(%arg0: i32, %arg1: i32) -> (i32, i32) {
    %c0_i32 = arith.constant 0 : i32
    %c0_i32_0 = arith.constant 0 : i32
    %c0_i32_1 = arith.constant 0 : i32
    return %c0_i32, %c0_i32_0 : i32, i32
  }
  func.func @transform_8(%arg0: i32, %arg1: i32) -> (i32, i32) {
    %c0_i32 = arith.constant 0 : i32
    %c0_i32_0 = arith.constant 0 : i32
    return %c0_i32, %arg1 : i32, i32
  }
  func.func @transform_9(%arg0: i32, %arg1: i32) -> (i32, i32) {
    %c0_i32 = arith.constant 0 : i32
    %c0_i32_0 = arith.constant 0 : i32
    return %c0_i32, %arg1 : i32, i32
  }
  func.func @transform_10(%arg0: i32, %arg1: i32) -> (i32, i32, i32) {
    %c0_i32 = arith.constant 0 : i32
    %c0_i32_0 = arith.constant 0 : i32
    return %arg0, %c0_i32, %arg1 : i32, i32, i32
  }
}

</mosaic_0001>

<bundles_post_ra>
// kernel: protein_interaction_forward.1
= control target key start
LH: loop header
LB: loop body
LE: loop exit
PB: predicated region body
PF: predicated region fallthrough
CT: control target
= control target key end

     0   :  { %s2169_s0 = inlined_call_operand.vmem [shape: bf16[2,16,128], index: 0, kind: input, shape index: {}]   ;;  %s2170_s1 = inlined_call_operand.vmem [shape: bf16[2,8,128], index: 1, kind: input, shape index: {}]   ;;  %s2171_s2 = inlined_call_operand.vmem [shape: bf16[128,256], index: 2, kind: input, shape index: {}]   ;;  %s2172_s3 = inlined_call_operand.vmem [shape: f32[1,256], index: 3, kind: input, shape index: {}]   ;;  %s2173_s4 = inlined_call_operand.vmem [shape: bf16[128,128], index: 4, kind: input, shape index: {}]   ;;  %s2174_s5 = inlined_call_operand.vmem [shape: f32[1,128], index: 5, kind: input, shape index: {}]   ;;  %s2175_s6 = inlined_call_operand.vmem [shape: bf16[128,128], index: 6, kind: input, shape index: {}]   ;;  %s2176_s7 = inlined_call_operand.vmem [shape: f32[1,128], index: 7, kind: input, shape index: {}]   ;;  %s2177_s8 = inlined_call_operand.vmem [shape: bf16[128,256], index: 8, kind: input, shape index: {}]   ;;  %s2178_s9 = inlined_call_operand.vmem [shape: f32[1,256], index: 9, kind: input, shape index: {}]   ;;  %s2179_s10 = inlined_call_operand.hbm [shape: f32[2,8,256], index: 10, kind: output, shape index: {}]  }
   0x1   :  { %2182 = sst [smem:[#allocation10_spill]] %s2177_s8 }
   0x2   :  { %15 = vsyncpa [#allocation5], 0 }
   0x3   :  { %17 = vsyncpa [#allocation5 + $0x1], 0  ;;  %s1846_s13 = smov 0   ;;  %s1848_s14 = smov 0  }
   0x4   :  { %s1850_s15 = smov 0   ;;  %s1852_s16 = smov 0  }
   0x5   :  { %s1854_s17 = smov 0   ;;  %s1856_s18 = smov 0  }
   0x6 LB: > { %2183 = sst [smem:[#allocation7_spill]] %s1776_s17  ;;  %s1397_s19 = sadd.s32 4294967295, %s1780_s18   ;;  %s1780_s18 = sphi %s1856_s18, %s23_s18   ;;  %s1776_s17 = sphi %s1854_s17, %s2192_s17   ;;  %s1772_s16 = sphi %s1852_s16, %s2191_s16   ;;  %s1768_s15 = sphi %s1850_s15, %s2195_s15   ;;  %s1764_s14 = sphi %s1848_s14, %s2194_s14   ;;  %s1760_s13 = sphi %s1846_s13, %s2193_s13  }
   0x7   : > { %s1398_s20 = sadd.s32 4294967294, %s1780_s18   ;;  %s32_s21 = sadd.s32 1, %s1776_s17 }
   0x8   : > { %s220_s22 = sadd.s32 1, %s1768_s15  ;;  %p33_p0 = scmp.ge.s32.totalorder %s32_s21, 2 }
   0x9   : > { %p227_p1 = scmp.ne.s32.totalorder %s1768_s15, %s1764_s14  ;;  %p228_p2 = scmp.eq.s32.totalorder %s1780_s18, 0 }
   0xa   : > { %p285_p3 = scmp.eq.s32.totalorder %s1397_s19, 1  ;;  %s2197_s21 = smov (%p33_p0, %s32_s21), 0 }
   0xb   : > { %2184 = sst [smem:[#allocation8_spill]] %s2197_s21  ;;  %p229_p4 = por %p228_p2, %p227_p1 }
   0xc   : > { %p1885_p5 = por %p285_p3, %p227_p1  ;;  %s217_s24 = ssub.s32 %s1776_s17, %s2197_s21 }
   0xd   : > { %p290_p6 = scmp.ne.s32.totalorder %s1764_s14, %s1760_s13  ;;  %p218_p7 = scmp.eq.s32.totalorder %s217_s24, 0 }
   0xe   : > { %p291_p8 = scmp.eq.s32.totalorder %s1398_s20, 1  ;;  %p1402_p10 = scmp.ge.s32.totalorder %s1780_s18, 2 }
   0xf   : > { %s1894_s25 = scalar_select %p218_p7, %s1768_s15, %s220_s22  }
  0x10   : > { %p1896_p9 = por %p291_p8, %p290_p6  ;;  %344 = sbr.rel (%p1402_p10) target bundleno = 43 (0x2b), region = 48 }
  0x11   : > { %2186 = sst [smem:[#allocation9_spill]] %s1894_s25 }
  0x17   : > { %347 = sbr.rel (!%p229_p4) target bundleno = 43 (0x2b), region = 52  ;;  %s349_s27 = sand.u32 (%p229_p4), 1, %s1768_s15  }
  0x18   : > { %s1404_s28 = sshll.u32 (%p229_p4), %s1776_s17, 2  ;;  %s1403_s29 = sshll.u32 (%p229_p4), %s349_s27, 6 }
  0x19   : > { %s2188_s8 = sld [smem:[#allocation10_spill]] (%p229_p4)  ;;  %s351_s19 = scalar_lea.vmem (%p229_p4), [#allocation3], %s1403_s29 }
  0x1f   : > { %s1908_s12 = scalar_lea.vmem %s2188_s8, %s1404_s28 }
  0x20   : > { %v369_v0 = vld [vmem:[%s1908_s12] sm:$0xf]  ;;  %v371_v1 = vld [vmem:[%s1908_s12 + $0x8] sm:$0xf]  ;;  %v373_v2 = vld [vmem:[%s1908_s12 + $0x10] sm:$0xf] }
  0x21   : > { %370 = vst [vmem:[%s351_s19] sm:$0xf] %v369_v0  ;;  %372 = vst [vmem:[%s351_s19 + $0x4] sm:$0xf] %v371_v1  ;;  %v375_v3 = vld [vmem:[%s1908_s12 + $0x18] sm:$0xf] }
  0x22   : > { %v377_v4 = vld [vmem:[%s1908_s12 + $0x20] sm:$0xf]  ;;  %374 = vst [vmem:[%s351_s19 + $0x8] sm:$0xf] %v373_v2  ;;  %376 = vst [vmem:[%s351_s19 + $0xc] sm:$0xf] %v375_v3 }
  0x23   : > { %378 = vst [vmem:[%s351_s19 + $0x10] sm:$0xf] %v377_v4  ;;  %v379_v5 = vld [vmem:[%s1908_s12 + $0x28] sm:$0xf]  ;;  %v381_v6 = vld [vmem:[%s1908_s12 + $0x30] sm:$0xf] }
  0x24   : > { %v383_v7 = vld [vmem:[%s1908_s12 + $0x38] sm:$0xf]  ;;  %380 = vst [vmem:[%s351_s19 + $0x14] sm:$0xf] %v379_v5  ;;  %382 = vst [vmem:[%s351_s19 + $0x18] sm:$0xf] %v381_v6 }
  0x25   : > { %384 = vst [vmem:[%s351_s19 + $0x1c] sm:$0xf] %v383_v7  ;;  %v385_v8 = vld [vmem:[%s1908_s12 + $0x40] sm:$0xf]  ;;  %v387_v9 = vld [vmem:[%s1908_s12 + $0x48] sm:$0xf] }
  0x26   : > { %v389_v10 = vld [vmem:[%s1908_s12 + $0x50] sm:$0xf]  ;;  %386 = vst [vmem:[%s351_s19 + $0x20] sm:$0xf] %v385_v8  ;;  %388 = vst [vmem:[%s351_s19 + $0x24] sm:$0xf] %v387_v9 }
  0x27   : > { %390 = vst [vmem:[%s351_s19 + $0x28] sm:$0xf] %v389_v10  ;;  %v391_v11 = vld [vmem:[%s1908_s12 + $0x58] sm:$0xf]  ;;  %v393_v12 = vld [vmem:[%s1908_s12 + $0x60] sm:$0xf] }
  0x28   : > { %v395_v13 = vld [vmem:[%s1908_s12 + $0x68] sm:$0xf]  ;;  %392 = vst [vmem:[%s351_s19 + $0x2c] sm:$0xf] %v391_v11  ;;  %394 = vst [vmem:[%s351_s19 + $0x30] sm:$0xf] %v393_v12 }
  0x29   : > { %396 = vst [vmem:[%s351_s19 + $0x34] sm:$0xf] %v395_v13  ;;  %v397_v14 = vld [vmem:[%s1908_s12 + $0x70] sm:$0xf]  ;;  %v399_v15 = vld [vmem:[%s1908_s12 + $0x78] sm:$0xf] }
  0x2a   : > { %398 = vst [vmem:[%s351_s19 + $0x38] sm:$0xf] %v397_v14  ;;  %400 = vst [vmem:[%s351_s19 + $0x3c] sm:$0xf] %v399_v15 }
  0x2b PF: > { %p1405_p11 = scmp.ge.s32.totalorder %s1780_s18, 1  ;;  %p460_p12 = scmp.lt.s32.totalorder %s1780_s18, 3 }
  0x2d   : > { %p461_p13 = pnand %p1405_p11, %p460_p12 }
  0x2e   : > { %s1929_s20 = sand.u32 (!%p461_p13), 1, %s1764_s14   ;;  %p531_p0 = scmp.lt.s32.totalorder (!%p461_p13), %s1772_s16, 1 }
  0x2f   : > { %464 = sbr.rel (%p461_p13) target bundleno = 1548 (0x60c), region = 97  ;;  %s1406_s22 = sshll.u32 (!%p461_p13), %s1929_s20, 6 }
  0x30   : > { %s1407_s24 = sshll.u32 (!%p461_p13), %s1929_s20, 4  ;;  %s1941_s11 = scalar_lea.vmem (!%p461_p13), [#allocation3], %s1406_s22 }
  0x31   : > { %s1943_s12 = scalar_lea.vmem (!%p461_p13), [#allocation4], %s1407_s24  ;;  %p1408_p1 = scmp.ne.s32.totalorder (!%p461_p13), %s1772_s16, 0 }
  0x36   : > { %s1935_s27 = scalar_select %p531_p0, %s1772_s16, 1 }
  0x37   : > { %539 = sbr.rel (%p1408_p1) target bundleno = 1283 (0x503), region = 105  ;;  %v1643_v16 = vld [vmem:[%s2171_s2 + $0x4] ss:$8 sps:$4 sm:$0xff] (!%p1408_p1)   ;;  %v1645_v17 = vld [vmem:[%s2171_s2] ss:$8 sps:$4 sm:$0xff] (!%p1408_p1)   ;;  %v1782_v18 = vmov (!%p1408_p1), 0.0   ;;  %v564_v45 = vlaneseq (!%p1408_p1) }
  0x38   : > { %1496 = vmatprep.subr.bf16.mxu1 (!%p1408_p1), %v1782_v18  ;;  %v1783_v19 = vmov (!%p1408_p1), 0   ;;  %666 = vmatprep.subr.bf16.mxu0 (!%p1408_p1), %v1643_v16  ;;  %v1646_v20 = vld [vmem:[%s2171_s2 + $0x14] ss:$8 sps:$4 sm:$0xff] (!%p1408_p1)   ;;  %vm1784_vm0 = vmmov (!%p1408_p1), 0   ;;  %v1648_v21 = vld [vmem:[%s2171_s2 + $0x10] ss:$8 sps:$4 sm:$0xff] (!%p1408_p1)  }
  0x39   : > { %698 = vmatprep.mubr.bf16.mxu0 (!%p1408_p1), %v1783_v19  ;;  %1512 = vmatprep.mubr.msk.bf16.mxu1 (!%p1408_p1), %vm1784_vm0, %v1782_v18  ;;  %v1649_v22 = vld [vmem:[%s2171_s2 + $0x24] ss:$8 sps:$4 sm:$0xff] (!%p1408_p1)   ;;  %v1651_v24 = vld [vmem:[%s2171_s2 + $0x20] ss:$8 sps:$4 sm:$0xff] (!%p1408_p1)   ;;  %v1653_v26 = vld [vmem:[%s2171_s2 + $0x34] ss:$8 sps:$4 sm:$0xff] (!%p1408_p1)  }
  0x3a   : > { %667 = vmatpush1.bf16.msra.mxu0 (!%p1408_p1), %v1645_v17  ;;  %v1652_v23 = vld [vmem:[%s2173_s4] sm:$0xff] (!%p1408_p1)   ;;  %v1656_v25 = vld [vmem:[%s2173_s4 + $0x8] sm:$0xff] (!%p1408_p1)   ;;  %v1660_v27 = vld [vmem:[%s2173_s4 + $0x10] sm:$0xff] (!%p1408_p1)   ;;  %v565_v46 = vshrl.u32 (!%p1408_p1), %v564_v45, 7  ;;  %vm921_vm1 = vcmask (!%p1408_p1), 130048  }
  0x3b   : > { %668 = vmatprep.subr.bf16.mxu0 (!%p1408_p1), %v1646_v20  ;;  %1497 = vmatpush3.bf16.msra.mxu1 (!%p1408_p1), %v1652_v23  ;;  %v1655_v28 = vld [vmem:[%s2171_s2 + $0x30] ss:$8 sps:$4 sm:$0xff] (!%p1408_p1)   ;;  %v1657_v29 = vld [vmem:[%s2171_s2 + $0x44] ss:$8 sps:$4 sm:$0xff] (!%p1408_p1)   ;;  %v1659_v31 = vld [vmem:[%s2171_s2 + $0x40] ss:$8 sps:$4 sm:$0xff] (!%p1408_p1)  }
  0x3c   : > { %1498 = vmatprep.subr.bf16.mxu1 (!%p1408_p1), %v1782_v18  ;;  %v1664_v30 = vld [vmem:[%s2173_s4 + $0x18] sm:$0xff] (!%p1408_p1)   ;;  %v1668_v33 = vld [vmem:[%s2173_s4 + $0x20] sm:$0xff] (!%p1408_p1)   ;;  %v1672_v37 = vld [vmem:[%s2173_s4 + $0x28] sm:$0xff] (!%p1408_p1)   ;;  %v566_v47 = vsub.s32 (!%p1408_p1), 0, %v565_v46  ;;  %v570_v49 = vsub.s32 (!%p1408_p1), 1, %v565_v46 }
  0x3d   : > { %v1661_v32 = vld [vmem:[%s2171_s2 + $0x54] ss:$8 sps:$4 sm:$0xff] (!%p1408_p1)   ;;  %v1663_v34 = vld [vmem:[%s2171_s2 + $0x50] ss:$8 sps:$4 sm:$0xff] (!%p1408_p1)   ;;  %v1665_v35 = vld [vmem:[%s2171_s2 + $0x64] ss:$8 sps:$4 sm:$0xff] (!%p1408_p1)  }
  0x3e   : > { %669 = vmatpush1.bf16.msra.mxu0 %v1648_v21  ;;  %v1667_v36 = vld [vmem:[%s2171_s2 + $0x60] ss:$8 sps:$4 sm:$0xff]   ;;  %v1669_v38 = vld [vmem:[%s2171_s2 + $0x74] ss:$8 sps:$4 sm:$0xff]   ;;  %v1671_v40 = vld [vmem:[%s2171_s2 + $0x70] ss:$8 sps:$4 sm:$0xff]  }
  0x3f   : > { %670 = vmatprep.subr.bf16.mxu0 %v1649_v22  ;;  %1499 = vmatpush3.bf16.msra.mxu1 %v1656_v25  ;;  %v1674_v39 = vld [vmem:[%s2173_s4 + $0x30] sm:$0xff]   ;;  %v1673_v41 = vld [vmem:[%s2169_s0] sm:$0xff]   ;;  %v1675_v42 = vld [vmem:[%s2173_s4 + $0x38] sm:$0xff]  }
  0x40   : > { %1500 = vmatprep.subr.bf16.mxu1 %v1782_v18  ;;  %v1677_v43 = vld [vmem:[%s2170_s1] sm:$0xff]   ;;  %v1676_v44 = vld [vmem:[%s2169_s0 + $0x8] sm:$0xff]  }
  0x41   : > { %v562_v48 = vld [vmem:[%s2172_s3] sm:$0x3] }
  0x42   : > { %671 = vmatpush1.bf16.msra.mxu0 %v1651_v24  ;;  %v567_v50 = vrot.slane %v562_v48, %v566_v47  ;;  %v571_v52 = vrot.slane %v562_v48, %v570_v49  ;;  %v1427_v58 = vld [vmem:[%s2174_s5] ss:$0 sm:$0xff]  ;;  %v1680_v47 = vld [vmem:[%s2175_s6 + $0x10] sm:$0xff]   ;;  %v1681_v49 = vld [vmem:[%s2175_s6 + $0x18] sm:$0xff]  }
  0x43   : > { %672 = vmatprep.subr.bf16.mxu0 %v1653_v26  ;;  %1501 = vmatpush3.bf16.msra.mxu1 %v1660_v27 }
  0x44   : > { %1502 = vmatprep.subr.bf16.mxu1 %v1782_v18 }
  0x46   : > { %673 = vmatpush1.bf16.msra.mxu0 %v1655_v28 }
  0x47   : > { %674 = vmatprep.subr.bf16.mxu0 %v1657_v29  ;;  %1503 = vmatpush3.bf16.msra.mxu1 %v1664_v30 }
  0x48   : > { %1504 = vmatprep.subr.bf16.mxu1 %v1782_v18 }
  0x4a   : > { %675 = vmatpush1.bf16.msra.mxu0 %v1659_v31 }
  0x4b   : > { %676 = vmatprep.subr.bf16.mxu0 %v1661_v32  ;;  %1505 = vmatpush3.bf16.msra.mxu1 %v1668_v33 }
  0x4c   : > { %1506 = vmatprep.subr.bf16.mxu1 %v1782_v18 }
  0x4e   : > { %677 = vmatpush1.bf16.msra.mxu0 %v1663_v34 }
  0x4f   : > { %678 = vmatprep.subr.bf16.mxu0 %v1665_v35  ;;  %1507 = vmatpush3.bf16.msra.mxu1 %v1672_v37 }
  0x50   : > { %1508 = vmatprep.subr.bf16.mxu1 %v1782_v18 }
  0x52   : > { %679 = vmatpush1.bf16.msra.mxu0 %v1667_v36 }
  0x53   : > { %680 = vmatprep.subr.bf16.mxu0 %v1669_v38  ;;  %1509 = vmatpush3.bf16.msra.mxu1 %v1674_v39 }
  0x54   : > { %1510 = vmatprep.subr.bf16.mxu1 %v1782_v18 }
  0x56   : > { %681 = vmatpush1.bf16.msra.mxu0 %v1671_v40 }
  0x57   : > { %1516 = vmatprep.subr.bf16.mxu0 %v1782_v18  ;;  %1511 = vmatpush3.bf16.msra.mxu1 %v1675_v42  ;;  %v1678_v42 = vld [vmem:[%s2175_s6] sm:$0xff]  }
  0x58   : > { %1528 = vmatprep.subr.bf16.mxu1 %v1782_v18 }
  0x59   : > { %699 = vmatmul.mubr.bf16.vlgmr.msra.gmra.mrb[0].mxu0 %v1673_v41 }
  0x5a   : > { %708 = vmatprep.mubr.bf16.mxu0 %v1783_v19  ;;  %1513 = vmatmul.mubr.bf16.vlgmr.msra.gmra.mrb[0].mxu1 %v1677_v43 }
  0x5b   : > { %1530 = vmatprep.mubr.msk.bf16.mxu1 %vm1784_vm0, %v1782_v18 }
  0x61   : > { %709 = vmatmul.mubr.bf16.gmra.mrb[4].mxu0 %v1676_v44  ;;  %v1679_v44 = vld [vmem:[%s2175_s6 + $0x8] sm:$0xff]  }
  0x62   : > { %1518 = vmatprep.mubr.msk.bf16.mxu0 %vm1784_vm0, %v1782_v18 }
 0x12c   : > { %v700_v51 = vpop.f32.mrb[0].mxu0 }
 0x12d   : > { %v702_v53 = vpop.f32.mrb[1].mxu0  ;;  %v701_v55 = vadd.f32 %v700_v51, %v567_v50  ;;  %v830_v59 = vpop.f32.mrb[0].mxu1  ;;  %v1683_v51 = vld [vmem:[%s2175_s6 + $0x28] sm:$0xff]  }
 0x12e   : > { %v704_v54 = vpop.f32.mrb[2].mxu0  ;;  %v703_v60 = vadd.f32 %v702_v53, %v571_v52  ;;  %v1514_v62 = vpop.f32.mrb[1].mxu1  ;;  %v831_v2 = vadd.f32 %v1427_v58, %v830_v59  ;;  %v1685_v53 = vld [vmem:[%s2175_s6 + $0x38] sm:$0xff]  }
 0x12f   : > { %v705_v56 = vadd.f32 %v704_v54, %v567_v50  ;;  %v706_v57 = vpop.f32.mrb[3].mxu0  ;;  %v833_v0 = vpop.f32.mrb[2].mxu1 }
 0x130   : > { %v707_v61 = vadd.f32 %v706_v57, %v571_v52  ;;  %v1515_v3 = vpop.f32.mrb[3].mxu1  ;;  %v837_v6 = vpack.c.bf16 %v831_v2, %v831_v2  ;;  %v834_v15 = vadd.f32 %v1427_v58, %v833_v0 }
 0x131   : > { %v839_v63 = vpack.c.bf16 %v705_v56, %v701_v55 }
 0x132   : > { %v946_v1 = vpack.c.bf16 %v707_v61, %v703_v60  ;;  %v838_v16 = vpack.c.bf16 %v834_v15, %v834_v15 }
 0x133   : > { %1517 = vmatpush3.bf16.xpose.msra.mxu0 %v839_v63  ;;  %v1439_v63 = vld [vmem:[%s2176_s7] ss:$0 sm:$0xff] }
 0x134   : > { %v710_v4 = vpop.f32.mrb[4].mxu0  ;;  %1529 = vmatpush3.bf16.msra.mxu1 %v946_v1  ;;  %1522 = vmatprep.subr.bf16.mxu0 %v1782_v18 }
 0x135   : > { %v712_v5 = vpop.f32.mrb[5].mxu0  ;;  %1540 = vmatprep.subr.bf16.mxu1 %v1782_v18  ;;  %v711_v8 = vadd.f32 %v710_v4, %v567_v50 }
 0x136   : > { %v714_v7 = vpop.f32.mrb[6].mxu0  ;;  %v713_v11 = vadd.f32 %v712_v5, %v571_v52 }
 0x137   : > { %v715_v9 = vadd.f32 %v714_v7, %v567_v50  ;;  %v716_v10 = vpop.f32.mrb[7].mxu0  ;;  %v1682_v50 = vld [vmem:[%s2175_s6 + $0x20] sm:$0xff]  }
 0x138   : > { %v717_v12 = vadd.f32 %v716_v10, %v571_v52  ;;  %v1684_v52 = vld [vmem:[%s2175_s6 + $0x30] sm:$0xff]  }
 0x139   : > { %v840_v13 = vpack.c.bf16 %v715_v9, %v711_v8 }
 0x13a   : > { %1519 = vmatmul.mubr.bf16.vlgmr.msra.gmra.mrb[8].mxu0 %v837_v6  ;;  %v947_v14 = vpack.c.bf16 %v717_v12, %v713_v11 }
 0x13b   : > { %1523 = vmatpush3.bf16.xpose.msra.mxu0 %v840_v13  ;;  %1524 = vmatprep.mubr.msk.bf16.mxu0 %vm1784_vm0, %v1782_v18 }
 0x13c   : > { %1534 = vmatprep.subr.bf16.mxu0 %v1782_v18 }
 0x142   : > { %1525 = vmatmul.mubr.bf16.vlgmr.msra.gmra.mrb[12].mxu0 %v838_v16 }
 0x143   : > { %1535 = vmatpush3.bf16.msra.mxu0 %v947_v14  ;;  %1536 = vmatprep.mubr.msk.bf16.mxu0 %vm1784_vm0, %v1782_v18 }
 0x20d   : > { %v875_v17 = vpop.f32.mrb[8].mxu0 }
 0x20e   : > { %v922_v19 = vsel %vm921_vm1, %v875_v17, -inf  ;;  %v1520_v20 = vpop.f32.mrb[9].mxu0 }
 0x20f   : > { %923 = vmax.xlane.f32.xlu0 %v922_v19  ;;  %v878_v21 = vpop.f32.mrb[10].mxu0 }
 0x210   : > { %v1521_v22 = vpop.f32.mrb[11].mxu0 }
 0x215   : > { %v915_v23 = vpop.f32.mrb[12].mxu0 }
 0x216   : > { %v1526_v24 = vpop.f32.mrb[13].mxu0  ;;  %v925_v25 = vsel %vm921_vm1, %v915_v23, -inf }
 0x217   : > { %926 = vmax.xlane.f32.xlu0 %v925_v25  ;;  %v918_v26 = vpop.f32.mrb[14].mxu0 }
 0x218   : > { %v1527_v27 = vpop.f32.mrb[15].mxu0 }
 0x29c   : > { %v924_v28 = vpop.xlane.xlu0 %923 }
 0x29d   : > { %v928_v29 = vsub.f32 %v875_v17, %v924_v28 }
 0x29f   : > { %v930_v30 = vmul.f32 1.442695, %v928_v29 }
 0x2a1   : > { %1686 = vpow2.f32 %v930_v30 }
 0x2a4   : > { %v927_v31 = vpop.xlane.xlu0 %926 }
 0x2a5   : > { %v929_v32 = vsub.f32 %v915_v23, %v927_v31 }
 0x2a7   : > { %v932_v33 = vmul.f32 1.442695, %v929_v32 }
 0x2a9   : > { %1688 = vpow2.f32 %v932_v33 }
 0x2ab   : > { %v1687_v34 = vpop.eup %1686 }
 0x2ac   : > { %v934_v35 = vsel %vm921_vm1, %v1687_v34, 0.0 }
 0x2ad   : > { %935 = vadd.xlane.f32.xlu1 %v934_v35 }
 0x2b3   : > { %v1689_v36 = vpop.eup %1688 }
 0x2b4   : > { %v937_v37 = vsel %vm921_vm1, %v1689_v36, 0.0 }
 0x2b5   : > { %938 = vadd.xlane.f32.xlu1 %v937_v37 }
 0x33a   : > { %v936_v38 = vpop.xlane.xlu1 %935 }
 0x33b   : > { %1690 = vrcp.f32 %v936_v38 }
 0x342   : > { %v939_v39 = vpop.xlane.xlu1 %938 }
 0x343   : > { %1692 = vrcp.f32 %v939_v39 }
 0x345   : > { %v1691_v40 = vpop.eup %1690 }
 0x346   : > { %v942_v41 = vmul.f32 %v1691_v40, %v1687_v34 }
 0x348   : > { %v944_v43 = vpack.c.bf16 %v942_v41, %v942_v41 }
 0x34a   : > { %1531 = vmatmul.mubr.msk.bf16.vlgmr.msra.gmra.mrb[4].mxu1 %vm921_vm1, %v944_v43 }
 0x34b   : > { %1541 = vmatpush3.bf16.msra.mxu1 %v1678_v42  ;;  %1556 = vmatprep.mubr.msk.bf16.mxu1 %vm1784_vm0, %v1782_v18 }
 0x34c   : > { %1542 = vmatprep.subr.bf16.mxu1 %v1782_v18 }
 0x34d   : > { %v1693_v45 = vpop.eup %1692 }
 0x34e   : > { %v943_v46 = vmul.f32 %v1693_v45, %v1689_v36 }
 0x34f   : > { %1543 = vmatpush3.bf16.msra.mxu1 %v1679_v44 }
 0x350   : > { %v945_v48 = vpack.c.bf16 %v943_v46, %v943_v46  ;;  %1544 = vmatprep.subr.bf16.mxu1 %v1782_v18 }
 0x352   : > { %1537 = vmatmul.mubr.msk.bf16.vlgmr.msra.gmra.mrb[16].mxu0 %vm921_vm1, %v945_v48 }
 0x353   : > { %1545 = vmatpush3.bf16.msra.mxu1 %v1680_v47 }
 0x354   : > { %1546 = vmatprep.subr.bf16.mxu1 %v1782_v18 }
 0x357   : > { %1547 = vmatpush3.bf16.msra.mxu1 %v1681_v49 }
 0x358   : > { %1548 = vmatprep.subr.bf16.mxu1 %v1782_v18 }
 0x35b   : > { %1549 = vmatpush3.bf16.msra.mxu1 %v1682_v50 }
 0x35c   : > { %1550 = vmatprep.subr.bf16.mxu1 %v1782_v18 }
 0x35f   : > { %1551 = vmatpush3.bf16.msra.mxu1 %v1683_v51 }
 0x360   : > { %1552 = vmatprep.subr.bf16.mxu1 %v1782_v18 }
 0x363   : > { %1553 = vmatpush3.bf16.msra.mxu1 %v1684_v52 }
 0x364   : > { %1554 = vmatprep.subr.bf16.mxu1 %v1782_v18 }
 0x367   : > { %1555 = vmatpush3.bf16.msra.mxu1 %v1685_v53 }
 0x41d   : > { %v985_v54 = vpop.f32.mrb[4].mxu1 }
 0x41e   : > { %v1532_v55 = vpop.f32.mrb[5].mxu1 }
 0x41f   : > { %v988_v56 = vpop.f32.mrb[6].mxu1 }
 0x420   : > { %v1533_v57 = vpop.f32.mrb[7].mxu1 }
 0x425   : > { %v1028_v58 = vpop.f32.mrb[16].mxu0 }
 0x426   : > { %v1034_v59 = vpack.c.bf16 %v1028_v58, %v985_v54  ;;  %v1538_v60 = vpop.f32.mrb[17].mxu0 }
 0x427   : > { %v1031_v61 = vpop.f32.mrb[18].mxu0 }
 0x428   : > { %v1539_v62 = vpop.f32.mrb[19].mxu0  ;;  %1557 = vmatmul.mubr.bf16.vlgmr.msra.gmra.mrb[8].mxu1 %v1034_v59 }
 0x4fb   : > { %v1140_v18 = vpop.f32.mrb[8].mxu1 }
 0x4fc   : > { %v1558_v0 = vpop.f32.mrb[9].mxu1  ;;  %v1141_v2 = vadd.f32 %v1439_v63, %v1140_v18 }
 0x4fd   : > { %v1143_v1 = vpop.f32.mrb[10].mxu1 }
 0x4fe   : > { %v1144_v3 = vadd.f32 %v1439_v63, %v1143_v1  ;;  %v1559_v4 = vpop.f32.mrb[11].mxu1 }
 0x500   : > { %v1147_v5 = vpack.c.bf16 %v1144_v3, %v1141_v2 }
 0x502   : > { %1148 = vst [vmem:[#allocation2] sm:$0xff] %v1147_v5 }
 0x503 PF: > { %v1694_v6 = vld [vmem:[%s1941_s11] sm:$0xff]   ;;  %v1785_v7 = vmov 0.0   ;;  %v1695_v8 = vld [vmem:[%s1941_s11 + $0x8] sm:$0xff]   ;;  %vm1786_vm2 = vmmov 0   ;;  %v1696_v9 = vld [vmem:[%s1941_s11 + $0x10] sm:$0xff]   ;;  %s2189_s29 = scalar_lea.vmem %s2178_s9, %s1935_s27  ;;  %s1458_s19 = sshll.u32 %s1772_s16, 7 }
 0x504   : > { %1560 = vmatprep.subr.bf16.mxu0 %v1785_v7  ;;  %1576 = vmatprep.mubr.msk.bf16.mxu0 %vm1786_vm2, %v1785_v7  ;;  %v1697_v10 = vld [vmem:[%s1941_s11 + $0x18] sm:$0xff]   ;;  %v1698_v11 = vld [vmem:[%s1941_s11 + $0x20] sm:$0xff]   ;;  %v1699_v12 = vld [vmem:[%s1941_s11 + $0x28] sm:$0xff]   ;;  %s1280_s22 = sshll.u32 %s1943_s12, 4  ;;  %s1265_s16 = scalar_lea.sflag [#allocation5], %s1929_s20  ;;  %s2118_s22 = int_to_ptr.vmem [resolvable:$true] %s1280_s22 }
 0x505   : > { %1561 = vmatpush3.bf16.msra.mxu0 %v1694_v6  ;;  %v1700_v13 = vld [vmem:[%s1941_s11 + $0x30] sm:$0xff]   ;;  %v1701_v14 = vld [vmem:[%s1941_s11 + $0x38] sm:$0xff]   ;;  %s2116_s11 = scalar_lea.hbm %s2179_s10, %s1458_s19  ;;  %s1702_s27 = scalar_lea.vmem %s2118_s22, 256 }
 0x506   : > { %1562 = vmatprep.subr.bf16.mxu0 %v1785_v7  ;;  %v1448_v16 = vld [vmem:[%s2189_s29] ss:$0 sm:$0xff]  ;;  %p1703_p2 = scmp.ne.s32.totalorder %s2118_s22, %s1702_s27  ;;  %s1787_s8 = smov [#allocation4]  }
 0x507   : > { %s1706_s28 = sshll.u32 %s1787_s8, 4  ;;  %s1707_s28 = int_to_ptr.vmem [resolvable:$false] %s1706_s28 }
 0x508   : > { %p1704_p3 = pnand %p1703_p2, %p1885_p5  ;;  %s1708_s17 = scalar_lea.vmem %s1707_s28, 512 }
 0x509   : > { %1563 = vmatpush3.bf16.msra.mxu0 %v1695_v8  ;;  %v1149_v15 = vld [vmem:[#allocation2] sm:$0xff]  ;;  %p1709_p6 = scmp.lt.s32.totalorder %s2118_s22, %s1707_s28  ;;  %p1710_p7 = scmp.lt.s32.totalorder %s1708_s17, %s1702_s27 }
 0x50a   : > { %1564 = vmatprep.subr.bf16.mxu0 %v1785_v7  ;;  %p1705_p4 = pneg %p1704_p3 }
 0x50b   : > { %p1711_p8 = por %p1710_p7, %p1709_p6 }
 0x50d   : > { %1565 = vmatpush3.bf16.msra.mxu0 %v1696_v9  ;;  %p1712_p11 = pnand %p1711_p8, %p1705_p4 }
 0x50e   : > { %1566 = vmatprep.subr.bf16.mxu0 %v1785_v7 }
 0x511   : > { %1567 = vmatpush3.bf16.msra.mxu0 %v1697_v10 }
 0x512   : > { %1568 = vmatprep.subr.bf16.mxu0 %v1785_v7 }
 0x515   : > { %1569 = vmatpush3.bf16.msra.mxu0 %v1698_v11 }
 0x516   : > { %1570 = vmatprep.subr.bf16.mxu0 %v1785_v7 }
 0x519   : > { %1571 = vmatpush3.bf16.msra.mxu0 %v1699_v12 }
 0x51a   : > { %1572 = vmatprep.subr.bf16.mxu0 %v1785_v7 }
 0x51d   : > { %1573 = vmatpush3.bf16.msra.mxu0 %v1700_v13 }
 0x51e   : > { %1574 = vmatprep.subr.bf16.mxu0 %v1785_v7 }
 0x521   : > { %1575 = vmatpush3.bf16.msra.mxu0 %v1701_v14 }
 0x524   : > { %1577 = vmatmul.mubr.bf16.vlgmr.msra.gmra.mrb[0].mxu0 %v1149_v15 }
 0x5f7   : > { %v1255_v17 = vpop.f32.mrb[0].mxu0 }
 0x5f8   : > { %v1256_v19 = vadd.f32 %v1448_v16, %v1255_v17  ;;  %v1578_v20 = vpop.f32.mrb[1].mxu0 }
 0x5f9   : > { %v1258_v21 = vpop.f32.mrb[2].mxu0 }
 0x5fa   : > { %1262 = vst [vmem:[%s1943_s12] sm:$0xff] %v1256_v19  ;;  %v1259_v22 = vadd.f32 %v1448_v16, %v1258_v21  ;;  %v1579_v23 = vpop.f32.mrb[3].mxu0 }
 0x5fc   : > { %1263 = vst [vmem:[%s1943_s12 + $0x8] sm:$0xff] %v1259_v22 }
 0x5fd   : > { %1715 = shalt.err (!%p1712_p11)
}
 0x5fe   : > { %s1716_s12 = scalar_lea.hbm %s2116_s11, 256  ;;  %s1720_s29 = scalar_lea.hbm %s2179_s10, 512 }
 0x5ff   : > { %p1717_p12 = scmp.ne.s32.totalorder %s2116_s11, %s1716_s12  ;;  %p1721_p1 = scmp.lt.u32.totalorder %s2116_s11, %s2179_s10 }
 0x600   : > { %p1722_p2 = scmp.lt.u32.totalorder %s1720_s29, %s1716_s12  ;;  %p1724_p4 = scmp.lt.u32.totalorder %s1716_s12, %s2116_s11 }
 0x601   : > { %p1718_p13 = pnand %p1717_p12, %p1885_p5 }
 0x602   : > { %p1723_p3 = por %p1722_p2, %p1721_p1 }
 0x603   : > { %p1719_p0 = pneg %p1718_p13 }
 0x604   : > { %p1725_p6 = por %p1724_p4, %p1723_p3 }
 0x606   : > { %p1726_p7 = pnand %p1725_p6, %p1719_p0 }
 0x608   : > { %1729 = shalt.err (!%p1726_p7)
}
 0x609   : > { %s1788_s24 = smov 128   ;;  %s1789_s27 = smov 256  }
 0x60a   : > { %s1790_s8 = smov 8  }
 0x60b   : > { %1580 = dma.vmem_to_hbm [thread:$0]  (%p1885_p5), %s2118_s22, 256, %s2116_s11, %s1265_s16, %s1788_s24, %s1789_s27, %s1790_s8  }
 0x60c PF: > { %s1295_s28 = sand.u32 1, %s1760_s13   ;;  %p1583_p8 = pnand %p1402_p10, %p1896_p9 }
 0x60d   : > { %s1296_s17 = scalar_lea.sflag [#allocation5], %s1295_s28 }
 0x60e   : > { %1755 = dma.done.wait (!%p1583_p8), %s1296_s17, 256  }
 0x60f   : > { %1757 = vsyncadd (!%p1583_p8), %s1296_s17, 4294967040  ;;  %s23_s18 = sadd.s32 1, %s1780_s18   ;;  %s2190_s12 = sld [smem:[#allocation9_spill]] }
 0x610   : > { %p20_p11 = scmp.ge.s32.totalorder %s23_s18, 4   ;;  %s2191_s16 = sld [smem:[#allocation7_spill]] }
 0x611   : > { %s2192_s17 = sld [smem:[#allocation8_spill]]  ;;  %s2193_s13 = smov %s1764_s14 }
 0x612   : > { %s2194_s14 = smov %s1768_s15  ;;  %22 = sbr.rel (!%p20_p11) target bundleno = 6 (0x6), region = 154 }
 0x615   : > { %s2195_s15 = smov %s2190_s12 }
 0x619   :  { %1301 = vsyncpa [#allocation5], 1 }
 0x61a   :  { %1303 = vsyncpa [#allocation5 + $0x1], 1 }

</bundles_post_ra>
